<compile_context>
chip_gen: v7x
topology: tpu7x:2x2x1
jax: 0.10.0
libtpu: 0.0.40
codegen_flags: <defaults>
</compile_context>

<pallas_src>
import functools
import math

import jax
import jax.numpy as jnp
from jax import lax
from jax.experimental import pallas as pl
from jax.experimental.pallas import tpu as pltpu


def _round_up(x, n):
    return ((x + n - 1) // n) * n


# --------------------------------------------------------------------------
# Kernel: one (TM, TN) logits tile.
# --------------------------------------------------------------------------
def _arc_margin_kernel(xn_ref, w_ref, lab_ref, o_ref, *,
                       s, cos_m, sin_m, th, mm, easy_margin, block_n):
    """xn_ref : (TM, D)  pre-normalized input rows (matmul dtype)
       w_ref  : (D, TN)  pre-normalized, pre-transposed weight tile
       lab_ref: (TM, 1)  int32 labels (-1 for padded rows)
       o_ref  : (TM, TN) output tile
    """
    j = pl.program_id(1)

    # cosine = normalize(x) @ normalize(W).T  — straight MXU matmul, both
    # operands arrive pre-normalized in the streaming dtype; accumulate f32.
    cosine = jnp.dot(xn_ref[...], w_ref[...], preferred_element_type=jnp.float32)

    # 1 - cos^2 <= 1 always, so a single maximum() suffices (was clip(0,1)).
    sine = jnp.sqrt(jnp.maximum(1.0 - cosine * cosine, 0.0))
    phi = cosine * cos_m - sine * sin_m
    if easy_margin:
        phi = jnp.where(cosine > 0.0, phi, cosine)
    else:
        phi = jnp.where(cosine > th, phi, cosine - mm)

    # One-hot via iota compare.  The tile's column origin is folded into the
    # (TM, 1) label column instead of a full (TM, TN) add.
    col = lax.broadcasted_iota(jnp.int32, cosine.shape, 1)
    one_hot = col == (lab_ref[...] - j * block_n)

    o_ref[...] = (jnp.where(one_hot, phi, cosine) * s).astype(o_ref.dtype)


# --------------------------------------------------------------------------
# Wrapper-side weight prep (normalize + transpose). In a real model this is
# computed once per weight update and cached, not once per forward call.
# --------------------------------------------------------------------------
def prepare_arc_margin_weight(weight, matmul_dtype=jnp.bfloat16):
    """weight: (N, D) raw parameter -> (D, N) L2-row-normalized, transposed."""
    w32 = weight.astype(jnp.float32)
    inv = lax.rsqrt(jnp.maximum(jnp.sum(w32 * w32, axis=1, keepdims=True), 1e-24))
    return (w32 * inv).T.astype(matmul_dtype)


def _tile_vmem_bytes(tm, tn, D, w_bytes, out_bytes, n_wbuf):
    return (n_wbuf * D * tn * w_bytes        # weight multi-buffer (dominant)
            + 2 * tm * D * w_bytes           # normalized-x double buffer
            + 2 * tm * 4                     # label double buffer
            + 2 * tm * tn * out_bytes)       # output double buffer


# --------------------------------------------------------------------------
# Public forward.
# --------------------------------------------------------------------------
def arc_margin_product(x, weight, label, *, s=30.0, m=0.5, easy_margin=False,
                       block_b=512, block_n=1024,
                       matmul_dtype=jnp.bfloat16, out_dtype=jnp.float32,
                       weight_buffers=2, weight_prepared=False):
    """ArcMarginProduct forward.

    x:      (B, D) features
    weight: (N, D) raw parameter, or (D, N) pre-normalized/transposed if
            weight_prepared=True (cache prepare_arc_margin_weight per update).
    label:  (B,) int class ids (must be >= 0; -1 is reserved for row padding).
    """
    B, D = x.shape
    if weight_prepared:
        wn_t = weight.astype(matmul_dtype)
        assert wn_t.shape[0] == D
        N = wn_t.shape[1]
    else:
        N, D2 = weight.shape
        assert D == D2, "feature dims must match"
        wn_t = prepare_arc_margin_weight(weight, matmul_dtype)      # (D, N)

    w_bytes = jnp.dtype(matmul_dtype).itemsize
    out_bytes = jnp.dtype(out_dtype).itemsize

    # ---- input normalization (hoisted out of the kernel entirely) ----------
    x32 = x.astype(jnp.float32)
    x_inv = lax.rsqrt(jnp.maximum(jnp.sum(x32 * x32, axis=1, keepdims=True),
                                  1e-24))
    xn = (x32 * x_inv).astype(matmul_dtype)                         # (B, D)

    # ---- tile sizes: big batch tile (weight is re-streamed once per i), ----
    # ---- big lane tile, shrunk against a v7x-safe VMEM budget. -------------
    tm = min(_round_up(block_b, 8), _round_up(B, 8))
    tn = min(_round_up(block_n, 128), _round_up(N, 128))
    vmem_budget = 48 << 20                      # leave headroom under 64 MiB
    while tn > 128 and _tile_vmem_bytes(tm, tn, D, w_bytes, out_bytes,
                                        weight_buffers) > vmem_budget:
        tn = max(128, ((tn // 2) // 128) * 128)
    while tm > 8 and _tile_vmem_bytes(tm, tn, D, w_bytes, out_bytes,
                                      weight_buffers) > vmem_budget:
        tm = max(8, ((tm // 2) // 8) * 8)

    Bp = _round_up(B, tm)
    Np = _round_up(N, tn)

    if Bp != B:
        xn = jnp.pad(xn, ((0, Bp - B), (0, 0)))           # zero rows -> cos=0
    lab = label.reshape(-1, 1).astype(jnp.int32)
    if Bp != B:
        lab = jnp.pad(lab, ((0, Bp - B), (0, 0)), constant_values=-1)
    if Np != N:
        wn_t = jnp.pad(wn_t, ((0, 0), (0, Np - N)))

    grid = (Bp // tm, Np // tn)

    kernel = functools.partial(
        _arc_margin_kernel,
        s=float(s), cos_m=math.cos(m), sin_m=math.sin(m),
        th=math.cos(math.pi - m), mm=math.sin(math.pi - m) * m,
        easy_margin=easy_margin, block_n=tn)

    # Weight BlockSpec; optional deeper buffering if DMA is exposed.
    if weight_buffers > 2:
        w_spec = pl.BlockSpec((D, tn), lambda i, j: (0, j),
                              pipeline_mode=pl.Buffered(weight_buffers))
    else:
        w_spec = pl.BlockSpec((D, tn), lambda i, j: (0, j))

    vmem_limit = min(_tile_vmem_bytes(tm, tn, D, w_bytes, out_bytes,
                                      weight_buffers) + (4 << 20), 64 << 20)
    vmem_limit = max(vmem_limit, 32 << 20)

    out = pl.pallas_call(
        kernel,
        out_shape=jax.ShapeDtypeStruct((Bp, Np), out_dtype),
        grid_spec=pltpu.PrefetchScalarGridSpec(
            num_scalar_prefetch=0,
            grid=grid,
            in_specs=[
                pl.BlockSpec((tm, D), lambda i, j: (i, 0)),   # normalized x
                w_spec,                                       # normalized W^T
                pl.BlockSpec((tm, 1), lambda i, j: (i, 0)),   # labels
            ],
            out_specs=pl.BlockSpec((tm, tn), lambda i, j: (i, j)),
        ),
        compiler_params=pltpu.CompilerParams(
            # No cross-iteration state left in the kernel -> both axes are
            # independent; on v7x either axis can be split across the 2 TCs.
            dimension_semantics=("parallel", "parallel"),
            vmem_limit_bytes=int(vmem_limit)),
        cost_estimate=pl.CostEstimate(
            flops=2 * B * N * D,
            transcendentals=B * N,
            bytes_accessed=(Bp * D * w_bytes
                            + (Bp // tm) * Np * D * w_bytes   # weight re-stream
                            + Bp * Np * out_bytes
                            + Bp * 4)),
    )(xn, wn_t, lab)

    return out[:B, :N]


# --------------------------------------------------------------------------
# Pure-JAX reference mirroring the PyTorch forward.
# --------------------------------------------------------------------------
def _reference(x, weight, label, *, s=30.0, m=0.5, easy_margin=False):
    eps = 1e-12
    xn = x / jnp.maximum(jnp.linalg.norm(x, axis=1, keepdims=True), eps)
    wn = weight / jnp.maximum(jnp.linalg.norm(weight, axis=1, keepdims=True), eps)
    cosine = xn @ wn.T
    sine = jnp.sqrt(jnp.clip(1.0 - cosine ** 2, 0.0, 1.0))
    cos_m, sin_m = math.cos(m), math.sin(m)
    th, mm = math.cos(math.pi - m), math.sin(math.pi - m) * m
    phi = cosine * cos_m - sine * sin_m
    if easy_margin:
        phi = jnp.where(cosine > 0, phi, cosine)
    else:
        phi = jnp.where(cosine > th, phi, cosine - mm)
    one_hot = jax.nn.one_hot(label, cosine.shape[1], dtype=cosine.dtype)
    return (one_hot * phi + (1.0 - one_hot) * cosine) * s


if __name__ == "__main__":
    B, in_features, out_features = 8, 64, 512

    key = jax.random.PRNGKey(0)
    kx, kw, kl = jax.random.split(key, 3)

    x = jax.random.normal(kx, (B, in_features), dtype=jnp.float32)

    # Deterministic xavier_uniform-style init for weight (out, in).
    bound = math.sqrt(6.0 / (in_features + out_features))
    weight = jax.random.uniform(kw, (out_features, in_features),
                                dtype=jnp.float32, minval=-bound, maxval=bound)

    label = jax.random.randint(kl, (B,), 0, out_features, dtype=jnp.int32)

    ref = _reference(x, weight, label, s=30.0, m=0.5, easy_margin=False)

    # f32 matmul path: tight tolerance vs the reference.
    out_f32 = arc_margin_product(x, weight, label, s=30.0, m=0.5,
                                 easy_margin=False, matmul_dtype=jnp.float32)
    out_f32 = jax.block_until_ready(out_f32)
    assert out_f32.shape == (B, out_features)
    assert jnp.allclose(out_f32, ref, atol=1e-4, rtol=1e-4), "f32 mismatch vs ref"

    # Default bf16-operand path (halves the streamed weight bytes; epilogue f32).
    # bf16 cosine rounding (~3e-3) can in principle flip the cosine>th branch
    # for borderline classes; acceptable for training use.
    out_bf16 = jax.block_until_ready(
        arc_margin_product(x, weight, label, s=30.0, m=0.5, easy_margin=False))
    assert jnp.allclose(out_bf16, ref, atol=3.5e-1), "bf16 mismatch vs ref"

    # easy_margin branch (f32 path for a tight check).
    out_easy = jax.block_until_ready(
        arc_margin_product(x, weight, label, s=30.0, m=0.5, easy_margin=True,
                           matmul_dtype=jnp.float32))
    ref_easy = _reference(x, weight, label, s=30.0, m=0.5, easy_margin=True)
    assert jnp.allclose(out_easy, ref_easy, atol=1e-4, rtol=1e-4), \
        "easy_margin mismatch vs ref"

    # Pre-prepared (cached) weight path, as a real model would use it.
    wn_t_cached = prepare_arc_margin_weight(weight, jnp.bfloat16)
    out_cached = jax.block_until_ready(
        arc_margin_product(x, wn_t_cached, label, s=30.0, m=0.5,
                           easy_margin=False, weight_prepared=True))
    assert jnp.allclose(out_cached, out_bf16, atol=1e-5), "cached-weight mismatch"

    # TODO(synk): for very large heads, fuse the downstream softmax/CE loss to
    # avoid materializing the full (B, N) logits at all.
    print("KERNEL_OK")
</pallas_src>

<mosaic_0001>
module attributes {stable_mosaic.version = 11 : i64} {
  func.func @_arc_margin_kernel(%arg0: i32, %arg1: i32, %arg2: memref<8x64xf32, #tpu.memory_space<vmem>>, %arg3: memref<64x512xf32, #tpu.memory_space<vmem>>, %arg4: memref<8x1xi32, #tpu.memory_space<vmem>>, %arg5: memref<8x512xf32, #tpu.memory_space<vmem>>) attributes {dimension_semantics = [#tpu.dimension_semantics<parallel>, #tpu.dimension_semantics<parallel>], iteration_bounds = array<i64: 1, 1>, scalar_prefetch = 0 : i64, scratch_operands = 0 : i64, tpu.core_type = #tpu.core_type<tc>, window_params = [{transform_indices = @transform_0, window_bounds = array<i64: 8, 64>}, {transform_indices = @transform_1, window_bounds = array<i64: 64, 512>}, {transform_indices = @transform_2, window_bounds = array<i64: 8, 1>}, {transform_indices = @transform_3, window_bounds = array<i64: 8, 512>}]} {
    %c0 = arith.constant 0 : index
    %c0_0 = arith.constant 0 : index
    %0 = vector.load %arg2[%c0, %c0_0] : memref<8x64xf32, #tpu.memory_space<vmem>>, vector<8x64xf32>
    %c0_1 = arith.constant 0 : index
    %c0_2 = arith.constant 0 : index
    %1 = vector.load %arg3[%c0_1, %c0_2] : memref<64x512xf32, #tpu.memory_space<vmem>>, vector<64x512xf32>
    %cst = arith.constant dense<0.000000e+00> : vector<8x512xf32>
    %2 = tpu.matmul %0, %1, %cst {dimension_numbers = #tpu.dot_dimension_numbers<[1], [0], [0], [1], [0, 0, 1, 1], [], []>} : vector<8x64xf32>, vector<64x512xf32>, vector<8x512xf32> -> vector<8x512xf32>
    %3 = arith.mulf %2, %2 : vector<8x512xf32>
    %cst_3 = arith.constant 1.000000e+00 : f32
    %4 = vector.broadcast %cst_3 : f32 to vector<8x512xf32>
    %5 = arith.subf %4, %3 : vector<8x512xf32>
    %cst_4 = arith.constant 0.000000e+00 : f32
    %6 = vector.broadcast %cst_4 : f32 to vector<8x512xf32>
    %7 = arith.maximumf %5, %6 : vector<8x512xf32>
    %8 = math.sqrt %7 : vector<8x512xf32>
    %cst_5 = arith.constant 0.87758255 : f32
    %9 = vector.broadcast %cst_5 : f32 to vector<8x512xf32>
    %10 = arith.mulf %2, %9 : vector<8x512xf32>
    %cst_6 = arith.constant 0.47942555 : f32
    %11 = vector.broadcast %cst_6 : f32 to vector<8x512xf32>
    %12 = arith.mulf %8, %11 : vector<8x512xf32>
    %13 = arith.subf %10, %12 : vector<8x512xf32>
    %cst_7 = arith.constant -0.87758255 : f32
    %14 = vector.broadcast %cst_7 : f32 to vector<8x512xf32>
    %15 = arith.cmpf ogt, %2, %14 : vector<8x512xf32>
    %cst_8 = arith.constant 0.239712775 : f32
    %16 = vector.broadcast %cst_8 : f32 to vector<8x512xf32>
    %17 = arith.subf %2, %16 : vector<8x512xf32>
    %18 = arith.select %15, %13, %17 : vector<8x512xi1>, vector<8x512xf32>
    %19 = tpu.iota {dimensions = array<i32: 1>} : vector<8x512xi32>
    %c0_9 = arith.constant 0 : index
    %c0_10 = arith.constant 0 : index
    %20 = vector.load %arg4[%c0_9, %c0_10] : memref<8x1xi32, #tpu.memory_space<vmem>>, vector<8x1xi32>
    %c512_i32 = arith.constant 512 : i32
    %21 = arith.muli %arg1, %c512_i32 : i32
    %22 = vector.broadcast %21 : i32 to vector<8x1xi32>
    %23 = arith.subi %20, %22 : vector<8x1xi32>
    %24 = vector.broadcast %23 : vector<8x1xi32> to vector<8x512xi32>
    %25 = arith.cmpi eq, %19, %24 : vector<8x512xi32>
    %26 = arith.select %25, %18, %2 : vector<8x512xi1>, vector<8x512xf32>
    %cst_11 = arith.constant 3.000000e+01 : f32
    %27 = vector.broadcast %cst_11 : f32 to vector<8x512xf32>
    %28 = arith.mulf %26, %27 : vector<8x512xf32>
    %c0_12 = arith.constant 0 : index
    %c0_13 = arith.constant 0 : index
    %29 = vector.load %arg5[%c0_12, %c0_13] : memref<8x512xf32, #tpu.memory_space<vmem>>, vector<8x512xf32>
    tpu.vector_store %arg5[%c0_12, %c0_13], %28 {strides = array<i32>} : memref<8x512xf32, #tpu.memory_space<vmem>>, vector<8x512xf32>,
    return
  }
  func.func @transform_0(%arg0: i32, %arg1: i32) -> (i32, i32) {
    %c0_i32 = arith.constant 0 : i32
    %c0_i32_0 = arith.constant 0 : i32
    return %arg0, %c0_i32 : i32, i32
  }
  func.func @transform_1(%arg0: i32, %arg1: i32) -> (i32, i32) {
    %c0_i32 = arith.constant 0 : i32
    %c0_i32_0 = arith.constant 0 : i32
    return %c0_i32, %arg1 : i32, i32
  }
  func.func @transform_2(%arg0: i32, %arg1: i32) -> (i32, i32) {
    %c0_i32 = arith.constant 0 : i32
    %c0_i32_0 = arith.constant 0 : i32
    return %arg0, %c0_i32 : i32, i32
  }
  func.func @transform_3(%arg0: i32, %arg1: i32) -> (i32, i32) {
    %c0_i32 = arith.constant 0 : i32
    return %arg0, %arg1 : i32, i32
  }
}

</mosaic_0001>

<bundles_post_ra>
// kernel: tpu_custom_call.1
= control target key start
LH: loop header
LB: loop body
LE: loop exit
PB: predicated region body
PF: predicated region fallthrough
CT: control target
= control target key end

     0   :  { %8 = vsyncpa [#allocation3], 0  ;;  %s523_s0 = inlined_call_operand.vmem [shape: f32[8,64], index: 0, kind: input, shape index: {}]   ;;  %s524_s1 = inlined_call_operand.hbm [shape: f32[64,512], index: 1, kind: input, shape index: {}]   ;;  %s525_s2 = inlined_call_operand.vmem [shape: s32[8,1], index: 2, kind: input, shape index: {}]   ;;  %s526_s3 = inlined_call_operand.hbm [shape: f32[8,512], index: 3, kind: output, shape index: {}]  }
   0x1   :  { %9 = vsyncpa [#allocation4], 0  ;;  %s416_s12 = smov [#allocation2]   ;;  %s368_s16 = scalar_lea.hbm %s524_s1, 4096 }
   0x2   :  { %s17_s13 = sshll.u32 %s416_s12, 4  ;;  %p369_p0 = scmp.ne.s32.totalorder %s524_s1, %s368_s16  ;;  %s18_s13 = int_to_ptr.vmem [resolvable:$true] %s17_s13 }
   0x3   :  { %p372_p1 = scmp.lt.u32.totalorder %s368_s16, %s524_s1 }
   0x5   :  { %p374_p2 = pnand %p372_p1, %p369_p0 }
   0x7   :  { %377 = shalt.err (!%p374_p2)
}
   0x8   :  { %s378_s21 = scalar_lea.vmem %s18_s13, 4096  ;;  %p383_p4 = scmp.lt.s32.totalorder %s18_s13, %s18_s13 }
   0x9   :  { %p379_p3 = scmp.ne.s32.totalorder %s18_s13, %s378_s21  ;;  %p384_p5 = scmp.lt.s32.totalorder %s378_s21, %s378_s21 }
   0xb   :  { %p385_p6 = por %p384_p5, %p383_p4 }
   0xd   :  { %p386_p7 = pnand %p385_p6, %p379_p3 }
   0xf   :  { %389 = shalt.err (!%p386_p7)
}
  0x10   :  { %s417_s22 = smov 512   ;;  %s418_s23 = smov 32  }
  0x11   :  { %23 = dma.hbm_to_vmem [thread:$0]  %s524_s1, 4096, %s18_s13, [#allocation3], %s417_s22, %s417_s22, %s418_s23  }
  0x12   :  { %412 = dma.done.wait [#allocation3], 4096  }
  0x13   :  { %413 = vsyncadd [#allocation3], 4294963200  ;;  %v419_v0 = vmov 0.0   ;;  %v420_v1 = vmov 0   ;;  %v31_v2 = vld [vmem:[#allocation2 + $0x8] sm:$0xff]  ;;  %v33_v4 = vld [vmem:[#allocation2 + $0x18] sm:$0xff] }
  0x14   :  { %130 = vmatprep.mubr.f32.mxu0 %v419_v0  ;;  %201 = vmatprep.mubr.f32.mxu1 %v419_v0  ;;  %v35_v3 = vld [vmem:[#allocation2 + $0x28] sm:$0xff]  ;;  %v37_v6 = vld [vmem:[#allocation2 + $0x38] sm:$0xff]  ;;  %v30_v7 = vld [vmem:[#allocation2] sm:$0xff]  ;;  %vm62_vm0 = vcmask 523264   ;;  %v272_v0 = vlaneseq }
  0x15   :  { %359 = vset.pattern.permute.xlu0 %v420_v1  ;;  %v321_v5 = vpack.c.bf16 %v35_v3, %v31_v2  ;;  %v34_v8 = vld [vmem:[#allocation2 + $0x20] sm:$0xff]  ;;  %v337_v9 = vpack.c.bf16 %v37_v6, %v33_v4  ;;  %v32_v11 = vld [vmem:[#allocation2 + $0x10] sm:$0xff]  ;;  %v39_v13 = vld [vmem:[#allocation2 + $0x48] sm:$0xff] }
  0x16   :  { %v323_v10 = vpack.c.bf16 %v34_v8, %v30_v7  ;;  %v36_v12 = vld [vmem:[#allocation2 + $0x30] sm:$0xff]  ;;  %v43_v15 = vld [vmem:[#allocation2 + $0x68] sm:$0xff]  ;;  %v41_v16 = vld [vmem:[#allocation2 + $0x58] sm:$0xff]  ;;  %v273_v4 = vand.u32 127, %v272_v0 }
  0x17   :  { %322 = vmatprep.subr.bf16.mxu0 %v321_v5  ;;  %v339_v14 = vpack.c.bf16 %v36_v12, %v32_v11  ;;  %v45_v17 = vld [vmem:[#allocation2 + $0x78] sm:$0xff]  ;;  %338 = vmatprep.subr.bf16.mxu1 %v337_v9  ;;  %v325_v18 = vpack.c.bf16 %v43_v15, %v39_v13  ;;  %v38_v20 = vld [vmem:[#allocation2 + $0x40] sm:$0xff]  ;;  %v40_v22 = vld [vmem:[#allocation2 + $0x50] sm:$0xff] }
  0x18   :  { %324 = vmatpush1.bf16.msra.mxu0 %v323_v10  ;;  %v341_v19 = vpack.c.bf16 %v45_v17, %v41_v16  ;;  %v42_v21 = vld [vmem:[#allocation2 + $0x60] sm:$0xff]  ;;  %v44_v24 = vld [vmem:[#allocation2 + $0x70] sm:$0xff]  ;;  %v47_v25 = vld [vmem:[#allocation2 + $0x88] sm:$0xff]  ;;  %v275_v6 = vadd.s32 256, %v273_v4  ;;  %v274_v8 = vadd.s32 128, %v273_v4  ;;  %v478_v11 = vadd.s32 384, %v273_v4 }
  0x19   :  { %340 = vmatpush1.bf16.msra.mxu1 %v339_v14  ;;  %v327_v23 = vpack.c.bf16 %v42_v21, %v38_v20  ;;  %v51_v26 = vld [vmem:[#allocation2 + $0xa8] sm:$0xff]  ;;  %326 = vmatprep.subr.bf16.mxu0 %v325_v18  ;;  %v343_v27 = vpack.c.bf16 %v44_v24, %v40_v22  ;;  %v49_v29 = vld [vmem:[#allocation2 + $0x98] sm:$0xff]  ;;  %v46_v31 = vld [vmem:[#allocation2 + $0x80] sm:$0xff] }
  0x1a   :  { %342 = vmatprep.subr.bf16.mxu1 %v341_v19  ;;  %v329_v28 = vpack.c.bf16 %v51_v26, %v47_v25  ;;  %v53_v30 = vld [vmem:[#allocation2 + $0xb8] sm:$0xff]  ;;  %v50_v33 = vld [vmem:[#allocation2 + $0xa0] sm:$0xff]  ;;  %v48_v34 = vld [vmem:[#allocation2 + $0x90] sm:$0xff] }
  0x1b   :  { %v345_v32 = vpack.c.bf16 %v53_v30, %v49_v29  ;;  %v52_v35 = vld [vmem:[#allocation2 + $0xb0] sm:$0xff]  ;;  %v331_v36 = vpack.c.bf16 %v50_v33, %v46_v31  ;;  %v55_v37 = vld [vmem:[#allocation2 + $0xc8] sm:$0xff]  ;;  %v57_v39 = vld [vmem:[#allocation2 + $0xd8] sm:$0xff] }
  0x1c   :  { %328 = vmatpush1.bf16.msra.mxu0 %v327_v23  ;;  %v59_v38 = vld [vmem:[#allocation2 + $0xe8] sm:$0xff]  ;;  %v347_v40 = vpack.c.bf16 %v52_v35, %v48_v34  ;;  %v61_v42 = vld [vmem:[#allocation2 + $0xf8] sm:$0xff]  ;;  %v54_v43 = vld [vmem:[#allocation2 + $0xc0] sm:$0xff] }
  0x1d   :  { %344 = vmatpush1.bf16.msra.mxu1 %v343_v27  ;;  %330 = vmatprep.subr.bf16.mxu0 %v329_v28  ;;  %v333_v41 = vpack.c.bf16 %v59_v38, %v55_v37  ;;  %v58_v44 = vld [vmem:[#allocation2 + $0xe0] sm:$0xff]  ;;  %v349_v45 = vpack.c.bf16 %v61_v42, %v57_v39  ;;  %v56_v46 = vld [vmem:[#allocation2 + $0xd0] sm:$0xff] }
  0x1e   :  { %346 = vmatprep.subr.bf16.mxu1 %v345_v32  ;;  %v60_v47 = vld [vmem:[#allocation2 + $0xf0] sm:$0xff]  ;;  %v277_v48 = vld [vmem:[%s525_s2] sm:$0xff]  ;;  %v335_v49 = vpack.c.bf16 %v58_v44, %v54_v43 }
  0x1f   :  { %282 = vperm.xlu0 %359, %v277_v48   ;;  %v351_v50 = vpack.c.bf16 %v60_v47, %v56_v46  ;;  %v29_v51 = vld [vmem:[%s523_s0] sm:$0xff]  ;;  %s421_s0 = smov [#allocation5]  }
  0x20   :  { %332 = vmatpush1.bf16.msra.mxu0 %v331_v36  ;;  %s306_s2 = sshll.u32 %s421_s0, 4  ;;  %s307_s2 = int_to_ptr.vmem [resolvable:$true] %s306_s2 }
  0x21   :  { %348 = vmatpush1.bf16.msra.mxu1 %v347_v40  ;;  %334 = vmatprep.subr.bf16.mxu0 %v333_v41  ;;  %s390_s29 = scalar_lea.vmem %s307_s2, 512  ;;  %p395_p9 = scmp.lt.s32.totalorder %s307_s2, %s307_s2 }
  0x22   :  { %350 = vmatprep.subr.bf16.mxu1 %v349_v45  ;;  %p391_p8 = scmp.ne.s32.totalorder %s307_s2, %s390_s29  ;;  %p396_p10 = scmp.lt.s32.totalorder %s390_s29, %s390_s29 }
  0x24   :  { %336 = vmatpush1.bf16.msra.mxu0 %v335_v49  ;;  %p397_p11 = por %p396_p10, %p395_p9 }
  0x25   :  { %352 = vmatpush1.bf16.msra.mxu1 %v351_v50 }
  0x26   :  { %p398_p12 = pnand %p397_p11, %p391_p8 }
  0x27   :  { %315 = vmatmul.mubr.msk.f32.vlgmr.msra.gmra.mrb[0].mxu0 %vm62_vm0, %v29_v51 }
  0x28   :  { %316 = vmatmul.mubr.msk.f32.vlgmr.msra.gmra.mrb[0].mxu1 %vm62_vm0, %v29_v51 }
  0x9e   :  { %v476_v7 = vpop.permute.xlu0 %282 }
  0x9f   :  { %vm284_vm1 = vcmp.eq.s32.totalorder %v273_v4, %v476_v7  ;;  %vm286_vm4 = vcmp.eq.s32.totalorder %v275_v6, %v476_v7  ;;  %vm285_vm6 = vcmp.eq.s32.totalorder %v274_v8, %v476_v7  ;;  %vm287_vm15 = vcmp.eq.s32.totalorder %v478_v11, %v476_v7 }
  0xfa   :  { %v460_v52 = vpop.f32.mrb[0].mxu0 }
  0xfb   :  { %v208_v53 = vmul.f32 %v460_v52, %v460_v52  ;;  %v464_v54 = vpop.f32.mrb[0].mxu1  ;;  %v466_v55 = vpop.f32.mrb[1].mxu0  ;;  %v248_v13 = vmul.f32 0.87758255, %v460_v52  ;;  %vm260_vm3 = vcmp.gt.f32.partialorder %v460_v52, -0.87758255 }
  0xfc   :  { %v210_v57 = vmul.f32 %v464_v54, %v464_v54  ;;  %v470_v58 = vpop.f32.mrb[1].mxu1  ;;  %v209_v59 = vmul.f32 %v466_v55, %v466_v55  ;;  %v317_v16 = vadd.f32 -0.23971277, %v460_v52  ;;  %v250_v17 = vmul.f32 0.87758255, %v464_v54 }
  0xfd   :  { %v212_v56 = vsub.f32 1.0, %v208_v53  ;;  %v211_v62 = vmul.f32 %v470_v58, %v470_v58  ;;  %vm262_vm7 = vcmp.gt.f32.partialorder %v464_v54, -0.87758255  ;;  %v319_v21 = vadd.f32 -0.23971277, %v464_v54 }
  0xfe   :  { %v214_v61 = vsub.f32 1.0, %v210_v57  ;;  %v213_v63 = vsub.f32 1.0, %v209_v59  ;;  %v249_v33 = vmul.f32 0.87758255, %v466_v55  ;;  %v318_v42 = vadd.f32 -0.23971277, %v466_v55 }
  0xff   :  { %v216_v60 = vmax.f32 %v212_v56, 0.0  ;;  %v215_v3 = vsub.f32 1.0, %v211_v62  ;;  %vm261_vm14 = vcmp.gt.f32.partialorder %v466_v55, -0.87758255  ;;  %v251_v45 = vmul.f32 0.87758255, %v470_v58 }
 0x100   :  { %v218_v1 = vmax.f32 %v214_v61, 0.0  ;;  %v217_v2 = vmax.f32 %v213_v63, 0.0  ;;  %v320_v51 = vadd.f32 -0.23971277, %v470_v58  ;;  %vm263_vm0 = vcmp.gt.f32.partialorder %v470_v58, -0.87758255 }
 0x101   :  { %360 = vrsqrt.f32 %v216_v60  ;;  %v219_v5 = vmax.f32 %v215_v3, 0.0  ;;  %vm222_vm2 = vcmp.eq.f32.partialorder %v216_v60, inf  ;;  %v225_v12 = vand.u32 2147483648, %v216_v60 }
 0x102   :  { %362 = vrsqrt.f32 %v218_v1  ;;  %vm224_vm5 = vcmp.eq.f32.partialorder %v216_v60, 0.0  ;;  %vm236_vm8 = vcmp.eq.f32.partialorder %v218_v1, inf  ;;  %v239_v23 = vand.u32 2147483648, %v218_v1 }
 0x103   :  { %364 = vrsqrt.f32 %v217_v2  ;;  %vm238_vm9 = vcmp.eq.f32.partialorder %v218_v1, 0.0  ;;  %vm229_vm10 = vcmp.eq.f32.partialorder %v217_v2, inf  ;;  %v232_v26 = vand.u32 2147483648, %v217_v2 }
 0x104   :  { %366 = vrsqrt.f32 %v219_v5  ;;  %vm231_vm11 = vcmp.eq.f32.partialorder %v217_v2, 0.0  ;;  %vm243_vm12 = vcmp.eq.f32.partialorder %v219_v5, inf  ;;  %v246_v36 = vand.u32 2147483648, %v219_v5 }
 0x105   :  { %vm245_vm13 = vcmp.eq.f32.partialorder %v219_v5, 0.0 }
 0x10b   :  { %v361_v9 = vpop.eup %360 }
 0x10c   :  { %v221_v10 = vmul.f32 %v361_v9, %v216_v60  ;;  %v363_v14 = vpop.eup %362 }
 0x10d   :  { %v365_v18 = vpop.eup %364  ;;  %v235_v20 = vmul.f32 %v363_v14, %v218_v1 }
 0x10e   :  { %v223_v15 = vsel %vm222_vm2, %v216_v60, %v221_v10  ;;  %v228_v24 = vmul.f32 %v365_v18, %v217_v2  ;;  %v367_v27 = vpop.eup %366 }
 0x10f   :  { %v226_v19 = vsel %vm224_vm5, %v225_v12, %v223_v15  ;;  %v237_v25 = vsel %vm236_vm8, %v218_v1, %v235_v20  ;;  %v242_v34 = vmul.f32 %v367_v27, %v219_v5 }
 0x110   :  { %v252_v22 = vmul.f32 0.47942555, %v226_v19  ;;  %v240_v29 = vsel %vm238_vm9, %v239_v23, %v237_v25  ;;  %v230_v30 = vsel %vm229_vm10, %v217_v2, %v228_v24 }
 0x111   :  { %v254_v31 = vmul.f32 0.47942555, %v240_v29  ;;  %v233_v32 = vsel %vm231_vm11, %v232_v26, %v230_v30  ;;  %v244_v39 = vsel %vm243_vm12, %v219_v5, %v242_v34 }
 0x112   :  { %v256_v28 = vsub.f32 %v248_v13, %v252_v22  ;;  %v253_v35 = vmul.f32 0.47942555, %v233_v32  ;;  %v247_v43 = vsel %vm245_vm13, %v246_v36, %v244_v39 }
 0x113   :  { %v258_v38 = vsub.f32 %v250_v17, %v254_v31  ;;  %v255_v46 = vmul.f32 0.47942555, %v247_v43 }
 0x114   :  { %v268_v37 = vsel %vm260_vm3, %v256_v28, %v317_v16  ;;  %v257_v41 = vsub.f32 %v249_v33, %v253_v35 }
 0x115   :  { %v288_v40 = vsel %vm284_vm1, %v268_v37, %v460_v52  ;;  %v270_v47 = vsel %vm262_vm7, %v258_v38, %v319_v21  ;;  %v259_v50 = vsub.f32 %v251_v45, %v255_v46 }
 0x116   :  { %v292_v44 = vmul.f32 30.0, %v288_v40  ;;  %v269_v48 = vsel %vm261_vm14, %v257_v41, %v318_v42  ;;  %v290_v49 = vsel %vm286_vm4, %v270_v47, %v464_v54 }
 0x117   :  { %v289_v52 = vsel %vm285_vm6, %v269_v48, %v466_v55  ;;  %v294_v53 = vmul.f32 30.0, %v290_v49  ;;  %v271_v57 = vsel %vm263_vm0, %v259_v50, %v320_v51 }
 0x118   :  { %296 = vst [vmem:[#allocation5] sm:$0xff] %v292_v44  ;;  %v293_v56 = vmul.f32 30.0, %v289_v52  ;;  %v291_v59 = vsel %vm287_vm15, %v271_v57, %v470_v58 }
 0x119   :  { %298 = vst [vmem:[#allocation5 + $0x10] sm:$0xff] %v294_v53  ;;  %v295_v54 = vmul.f32 30.0, %v291_v59 }
 0x11a   :  { %297 = vst [vmem:[#allocation5 + $0x8] sm:$0xff] %v293_v56 }
 0x11b   :  { %299 = vst [vmem:[#allocation5 + $0x18] sm:$0xff] %v295_v54 }
 0x11c   :  { %401 = shalt.err (!%p398_p12)
}
 0x11d   :  { %s402_s5 = scalar_lea.hbm %s526_s3, 512 }
 0x11e   :  { %p403_p13 = scmp.ne.s32.totalorder %s526_s3, %s402_s5  ;;  %p406_p0 = scmp.lt.u32.totalorder %s402_s5, %s526_s3 }
 0x120   :  { %p408_p1 = pnand %p406_p0, %p403_p13 }
 0x122   :  { %411 = shalt.err (!%p408_p1)
}
 0x123   :  { %309 = dma.vmem_to_hbm [thread:$0]  %s307_s2, 512, %s526_s3, [#allocation4]  }
 0x124   :  { %414 = dma.done.wait [#allocation4], 512  }
 0x125   :  { %415 = vsyncadd [#allocation4], 4294966784 }
 0x126   :  { %313 = vsyncpa [#allocation3], 1 }
 0x127   :  { %314 = vsyncpa [#allocation4], 1 }

</bundles_post_ra>
